<compile_context>
chip_gen: v7x
topology: tpu7x:2x2x1
jax: 0.10.0
libtpu: 0.0.40
codegen_flags: <defaults>
</compile_context>

<pallas_src>
import inspect
import math
from functools import partial

import jax
import jax.numpy as jnp
from jax.experimental import pallas as pl
from jax.experimental.pallas import tpu as pltpu


def _round_up(x, m):
    return (x + m - 1) // m * m


try:
    _HAS_PIPELINE_MODE = (
        hasattr(pl, "Buffered")
        and "pipeline_mode" in inspect.signature(pl.BlockSpec).parameters
    )
except Exception:  # pragma: no cover
    _HAS_PIPELINE_MODE = False


def _vmem_capacity_bytes():
    try:
        cap = getattr(pltpu.get_tpu_info(), "vmem_capacity_bytes", None)
        if cap:
            return int(cap)
    except Exception:
        pass
    return 64 * 1024 * 1024  # conservative: v7x per-TensorCore VMEM


def _plan_tiling(T, hidden, n_experts, itemsize, out_lanes, tile_t):
    """Pick (tile_t, x_buffers, vmem_limit_bytes) from the chip's VMEM capacity."""
    cap = _vmem_capacity_bytes()
    budget = int(cap * 0.85)                      # headroom for compiler temporaries
    margin = 4 << 20
    w_bufs = 1 if _HAS_PIPELINE_MODE else 2       # resident weight buffering
    w_bytes = hidden * n_experts * itemsize * w_bufs
    t_cap = _round_up(T, 8)

    def need(t, x_bufs):
        return (t * hidden * itemsize * x_bufs    # streamed x tiles
                + w_bytes                          # resident (H, E) weight
                + t * out_lanes * 4 * 2            # packed output slab (double-buffered)
                + margin)

    if tile_t is not None:
        cands = [max(8, min(_round_up(tile_t, 8), t_cap))]
    else:
        cands = [c for c in (2048, 1024, 512, 256, 128, 64, 32, 16, 8) if c <= t_cap]
        cands = cands or [t_cap]

    pick_t, pick_bufs = cands[-1], 2
    for t in cands:
        found = False
        for x_bufs in (3, 2):
            if need(t, x_bufs) <= budget:
                pick_t, pick_bufs = t, x_bufs
                found = True
                break
        if found:
            break

    # Short grids: force >= 2 steps so 2-TC chips (v7x megacore) split the token axis.
    if pl.cdiv(T, pick_t) < 2 and T > 8:
        pick_t = max(8, _round_up(pl.cdiv(T, 2), 8))
    if pl.cdiv(T, pick_t) < 3:
        pick_bufs = 2

    vmem_limit = int(max(32 << 20, min(budget, need(pick_t, pick_bufs) + (16 << 20))))
    return pick_t, pick_bufs, vmem_limit


def _moe_gate_kernel(x_ref, w_ref, out_ref, *, top_k, norm_topk_prob):
    x = x_ref[...]                                   # (tile_t, H), activation dtype
    w = w_ref[...]                                   # (H, E), VMEM-resident across steps

    # Canonical (M,K)x(K,N) MXU matmul, f32 accumulate (no per-step RHS relayout).
    logits = jnp.dot(x, w, preferred_element_type=jnp.float32)     # (tile_t, E)
    tile_t, n_experts = logits.shape

    # Numerically-stable exp; full softmax denominator only when it doesn't
    # cancel in the top-k renormalization.
    m = jnp.max(logits, axis=-1, keepdims=True)                    # XLU reduce
    e = jnp.exp(logits - m)                                        # EUP, in (0, 1]

    # Fused top-k: pack (exp value, reversed expert id) into one monotone int32
    # key so each selection is a single XLU max-reduce.  Ties -> lowest index.
    idx_bits = max(1, (n_experts - 1).bit_length())
    idx_mask = (1 << idx_bits) - 1
    inv_mask = jnp.int32(~idx_mask)

    lane_e = jax.lax.broadcasted_iota(jnp.int32, (tile_t, n_experts), 1)
    keys = (pltpu.bitcast(e, jnp.int32) & inv_mask) | (jnp.int32(idx_mask) - lane_e)

    out_lanes = out_ref.shape[-1]                                  # 128: lane-dense store
    lane_o = jax.lax.broadcasted_iota(jnp.int32, (tile_t, out_lanes), 1)
    w_slab = jnp.zeros((tile_t, out_lanes), jnp.float32)
    i_slab = jnp.zeros((tile_t, out_lanes), jnp.int32)

    picked_sum = None
    work = keys
    for k in range(top_k):
        best = jnp.max(work, axis=-1, keepdims=True)               # 1 XLU reduce per k
        idx = jnp.int32(idx_mask) - (best & jnp.int32(idx_mask))   # (tile_t, 1) int32
        val = pltpu.bitcast(best & inv_mask, jnp.float32)          # (tile_t, 1) f32
        w_slab = jnp.where(lane_o == k, val, w_slab)
        i_slab = jnp.where(lane_o == (top_k + k), idx, i_slab)
        picked_sum = val if picked_sum is None else picked_sum + val
        if k + 1 < top_k:
            work = jnp.where(work == best, jnp.int32(-1), work)    # keys are unique per lane

    if top_k > 1 and norm_topk_prob:
        # Softmax denominator cancels in the top-k renormalization.
        inv = pl.reciprocal(picked_sum + 1e-20, approx=True)
    else:
        inv = pl.reciprocal(jnp.sum(e, axis=-1, keepdims=True), approx=True)

    # Single packed slab: lanes [0, top_k) bitcast f32 weights,
    # lanes [top_k, 2*top_k) int32 expert ids, rest zero.  One unmasked store.
    out_ref[...] = jnp.where(lane_o < top_k,
                             pltpu.bitcast(w_slab * inv, jnp.int32),
                             i_slab)


def moe_gate(hidden_states, weight, *, top_k, norm_topk_prob=True,
             scoring_func="softmax", tile_t=None):
    """hidden_states: (bsz, seq_len, hidden); weight: (n_experts, hidden).

    Returns (topk_idx (T, top_k) int32, topk_weight (T, top_k) f32, aux_loss=None).
    """
    if scoring_func != "softmax":
        raise NotImplementedError(
            f"insupportable scoring function for MoE gating: {scoring_func}")

    bsz, seq_len, hidden = hidden_states.shape
    n_experts = weight.shape[0]
    assert 1 <= top_k <= n_experts
    T = bsz * seq_len

    # Stream the activations directly (no cast, no pad); normalize the weight
    # dtype to the activation dtype and present it once as canonical (K, N)=(H, E).
    x = hidden_states.reshape(T, hidden)
    w_t = weight.astype(x.dtype).T                                 # (hidden, n_experts)

    out_lanes = max(128, _round_up(2 * top_k, 128))
    tile_t, x_bufs, vmem_limit = _plan_tiling(
        T, hidden, n_experts, x.dtype.itemsize, out_lanes, tile_t)
    grid = (pl.cdiv(T, tile_t),)

    kernel = partial(_moe_gate_kernel, top_k=top_k, norm_topk_prob=norm_topk_prob)
    cost = pl.CostEstimate(
        flops=2 * T * hidden * n_experts,
        transcendentals=T * n_experts,
        bytes_accessed=(T * hidden * x.dtype.itemsize
                        + hidden * n_experts * w_t.dtype.itemsize
                        + T * out_lanes * 4),
    )

    def build(use_pipeline_mode):
        def spec(shape, index_map, bufs):
            if use_pipeline_mode and bufs is not None:
                return pl.BlockSpec(shape, index_map, pipeline_mode=pl.Buffered(bufs))
            return pl.BlockSpec(shape, index_map)

        return pl.pallas_call(
            kernel,
            out_shape=jax.ShapeDtypeStruct((T, out_lanes), jnp.int32),
            grid=grid,
            in_specs=[
                spec((tile_t, hidden), lambda i: (i, 0), x_bufs),   # streamed x tiles
                spec((hidden, n_experts), lambda i: (0, 0), 1),     # resident gate weight
            ],
            out_specs=spec((tile_t, out_lanes), lambda i: (i, 0), None),
            compiler_params=pltpu.CompilerParams(
                dimension_semantics=("parallel",),                  # megacore token sharding
                vmem_limit_bytes=vmem_limit,
            ),
            cost_estimate=cost,
        )

    try:
        packed = build(_HAS_PIPELINE_MODE)(x, w_t)
    except Exception:
        if not _HAS_PIPELINE_MODE:
            raise
        packed = build(False)(x, w_t)                               # conservative fallback

    topk_weight = jax.lax.bitcast_convert_type(packed[:, :top_k], jnp.float32)
    topk_idx = packed[:, top_k:2 * top_k]
    aux_loss = None  # eval-mode semantics of the PyTorch module
    return topk_idx, topk_weight, aux_loss


def _init_gate_weight(key, n_experts, hidden):
    # kaiming_uniform_(a=sqrt(5)) -> Uniform(-1/sqrt(fan_in), 1/sqrt(fan_in)), fan_in = hidden
    bound = 1.0 / math.sqrt(hidden)
    return jax.random.uniform(key, (n_experts, hidden), jnp.float32, -bound, bound)


def _ref_gate(hidden_states, weight, top_k, norm_topk_prob):
    x = hidden_states.reshape(-1, hidden_states.shape[-1]).astype(jnp.float32)
    logits = x @ weight.astype(jnp.float32).T
    scores = jax.nn.softmax(logits, axis=-1)
    w, i = jax.lax.top_k(scores, top_k)
    if top_k > 1 and norm_topk_prob:
        w = w / (jnp.sum(w, axis=-1, keepdims=True) + 1e-20)
    return i.astype(jnp.int32), w


if __name__ == "__main__":
    # Small config: bsz=2, seq=8, hidden=32, n_routed_experts=8, top_k=2
    bsz, seq_len, hidden = 2, 8, 32
    n_routed_experts, top_k = 8, 2

    key = jax.random.PRNGKey(0)
    k_x, k_w, k_r = jax.random.split(key, 3)
    hidden_states = jax.random.normal(k_x, (bsz, seq_len, hidden), jnp.float32)
    weight = _init_gate_weight(k_w, n_routed_experts, hidden)

    # f32, norm_topk_prob=True
    topk_idx, topk_weight, aux_loss = moe_gate(
        hidden_states, weight, top_k=top_k, norm_topk_prob=True)
    jax.block_until_ready((topk_idx, topk_weight))
    ref_i, ref_w = _ref_gate(hidden_states, weight, top_k, True)
    assert topk_idx.shape == (bsz * seq_len, top_k)
    assert jnp.array_equal(topk_idx, ref_i), "topk indices mismatch"
    assert jnp.allclose(topk_weight, ref_w, atol=5e-3, rtol=5e-3), "topk weights mismatch"
    assert aux_loss is None

    # norm_topk_prob=False (plain softmax probabilities of the selected experts)
    ti, tw, _ = moe_gate(hidden_states, weight, top_k=top_k, norm_topk_prob=False)
    jax.block_until_ready((ti, tw))
    ref_i2, ref_w2 = _ref_gate(hidden_states, weight, top_k, False)
    assert jnp.array_equal(ti, ref_i2), "topk indices mismatch (no renorm)"
    assert jnp.allclose(tw, ref_w2, atol=5e-3, rtol=5e-3), "topk weights mismatch (no renorm)"

    # Ragged token count (T=15, not a multiple of the 8-row tile): exercises the
    # partial final block handling (no wrapper-side padding copy).
    hs_ragged = jax.random.normal(k_r, (3, 5, hidden), jnp.float32)
    ti_r, tw_r, _ = moe_gate(hs_ragged, weight, top_k=top_k, norm_topk_prob=True)
    jax.block_until_ready((ti_r, tw_r))
    ref_ir, ref_wr = _ref_gate(hs_ragged, weight, top_k, True)
    assert jnp.array_equal(ti_r, ref_ir), "ragged topk indices mismatch"
    assert jnp.allclose(tw_r, ref_wr, atol=5e-3, rtol=5e-3), "ragged topk weights mismatch"

    # bf16 smoke test (production path: bf16 activations + bf16 gate weight).
    ti_bf, tw_bf, _ = moe_gate(
        hidden_states.astype(jnp.bfloat16), weight.astype(jnp.bfloat16),
        top_k=top_k, norm_topk_prob=True)
    jax.block_until_ready((ti_bf, tw_bf))
    assert ti_bf.shape == (bsz * seq_len, top_k)
    assert bool(jnp.all((ti_bf >= 0) & (ti_bf < n_routed_experts)))
    assert bool(jnp.all(jnp.isfinite(tw_bf)))
    assert bool(jnp.all(jnp.abs(jnp.sum(tw_bf, axis=-1) - 1.0) < 1e-2))

    print("KERNEL_OK")
</pallas_src>

<mosaic_0001>
module attributes {stable_mosaic.version = 11 : i64} {
  func.func @_moe_gate_kernel(%arg0: i32, %arg1: memref<8x32xf32, #tpu.memory_space<vmem>>, %arg2: memref<32x8xf32, #tpu.memory_space<vmem>>, %arg3: memref<8x128xi32, #tpu.memory_space<vmem>>) attributes {dimension_semantics = [#tpu.dimension_semantics<parallel>], iteration_bounds = array<i64: 2>, scalar_prefetch = 0 : i64, scratch_operands = 0 : i64, tpu.core_type = #tpu.core_type<tc>, window_params = [{pipeline_mode = #tpu.pipeline_mode<double_buffered>, transform_indices = @transform_0, window_bounds = array<i64: 8, 32>}, {pipeline_mode = #tpu.pipeline_mode<synchronous>, transform_indices = @transform_1, window_bounds = array<i64: 32, 8>}, {transform_indices = @transform_2, window_bounds = array<i64: 8, 128>}]} {
    %c0 = arith.constant 0 : index
    %c0_0 = arith.constant 0 : index
    %0 = vector.load %arg1[%c0, %c0_0] : memref<8x32xf32, #tpu.memory_space<vmem>>, vector<8x32xf32>
    %c0_1 = arith.constant 0 : index
    %c0_2 = arith.constant 0 : index
    %1 = vector.load %arg2[%c0_1, %c0_2] : memref<32x8xf32, #tpu.memory_space<vmem>>, vector<32x8xf32>
    %cst = arith.constant dense<0.000000e+00> : vector<8x8xf32>
    %2 = tpu.matmul %0, %1, %cst {dimension_numbers = #tpu.dot_dimension_numbers<[1], [0], [0], [1], [0, 0, 1, 1], [], []>} : vector<8x32xf32>, vector<32x8xf32>, vector<8x8xf32> -> vector<8x8xf32>
    %cst_3 = arith.constant dense<0xFF800000> : vector<8xf32>
    %3 = vector.multi_reduction <maximumf>, %2, %cst_3 [1] : vector<8x8xf32> to vector<8xf32>
    %4 = vector.shape_cast %3 : vector<8xf32> to vector<8x1xf32>
    %5 = vector.broadcast %4 : vector<8x1xf32> to vector<8x8xf32>
    %6 = arith.subf %2, %5 : vector<8x8xf32>
    %7 = math.exp %6 : vector<8x8xf32>
    %8 = tpu.iota {dimensions = array<i32: 1>} : vector<8x8xi32>
    %9 = tpu.bitcast %7 : vector<8x8xf32> -> vector<8x8xi32>
    %c-8_i32 = arith.constant -8 : i32
    %10 = vector.broadcast %c-8_i32 : i32 to vector<8x8xi32>
    %11 = arith.andi %9, %10 : vector<8x8xi32>
    %c7_i32 = arith.constant 7 : i32
    %12 = vector.broadcast %c7_i32 : i32 to vector<8x8xi32>
    %13 = arith.subi %12, %8 : vector<8x8xi32>
    %14 = arith.ori %11, %13 : vector<8x8xi32>
    %15 = tpu.iota {dimensions = array<i32: 1>} : vector<8x128xi32>
    %cst_4 = arith.constant 0.000000e+00 : f32
    %16 = vector.broadcast %cst_4 : f32 to vector<8x128xf32>
    %c0_i32 = arith.constant 0 : i32
    %17 = vector.broadcast %c0_i32 : i32 to vector<8x128xi32>
    %cst_5 = arith.constant dense<-2147483648> : vector<8xi32>
    %18 = vector.multi_reduction <maxsi>, %14, %cst_5 [1] : vector<8x8xi32> to vector<8xi32>
    %19 = vector.shape_cast %18 : vector<8xi32> to vector<8x1xi32>
    %c7_i32_6 = arith.constant 7 : i32
    %20 = vector.broadcast %c7_i32_6 : i32 to vector<8x1xi32>
    %21 = arith.andi %19, %20 : vector<8x1xi32>
    %c7_i32_7 = arith.constant 7 : i32
    %22 = vector.broadcast %c7_i32_7 : i32 to vector<8x1xi32>
    %23 = arith.subi %22, %21 : vector<8x1xi32>
    %c-8_i32_8 = arith.constant -8 : i32
    %24 = vector.broadcast %c-8_i32_8 : i32 to vector<8x1xi32>
    %25 = arith.andi %19, %24 : vector<8x1xi32>
    %26 = tpu.bitcast %25 : vector<8x1xi32> -> vector<8x1xf32>
    %c0_i32_9 = arith.constant 0 : i32
    %27 = vector.broadcast %c0_i32_9 : i32 to vector<8x128xi32>
    %28 = arith.cmpi eq, %15, %27 : vector<8x128xi32>
    %29 = vector.shape_cast %26 : vector<8x1xf32> to vector<8x1xf32>
    %30 = vector.broadcast %29 : vector<8x1xf32> to vector<8x128xf32>
    %31 = arith.select %28, %30, %16 : vector<8x128xi1>, vector<8x128xf32>
    %c2_i32 = arith.constant 2 : i32
    %32 = vector.broadcast %c2_i32 : i32 to vector<8x128xi32>
    %33 = arith.cmpi eq, %15, %32 : vector<8x128xi32>
    %34 = vector.shape_cast %23 : vector<8x1xi32> to vector<8x1xi32>
    %35 = vector.broadcast %34 : vector<8x1xi32> to vector<8x128xi32>
    %36 = arith.select %33, %35, %17 : vector<8x128xi1>, vector<8x128xi32>
    %37 = vector.broadcast %19 : vector<8x1xi32> to vector<8x8xi32>
    %38 = arith.cmpi eq, %14, %37 : vector<8x8xi32>
    %c-1_i32 = arith.constant -1 : i32
    %39 = vector.broadcast %c-1_i32 : i32 to vector<8x8xi32>
    %40 = arith.select %38, %39, %14 : vector<8x8xi1>, vector<8x8xi32>
    %cst_10 = arith.constant dense<-2147483648> : vector<8xi32>
    %41 = vector.multi_reduction <maxsi>, %40, %cst_10 [1] : vector<8x8xi32> to vector<8xi32>
    %42 = vector.shape_cast %41 : vector<8xi32> to vector<8x1xi32>
    %c7_i32_11 = arith.constant 7 : i32
    %43 = vector.broadcast %c7_i32_11 : i32 to vector<8x1xi32>
    %44 = arith.andi %42, %43 : vector<8x1xi32>
    %c7_i32_12 = arith.constant 7 : i32
    %45 = vector.broadcast %c7_i32_12 : i32 to vector<8x1xi32>
    %46 = arith.subi %45, %44 : vector<8x1xi32>
    %c-8_i32_13 = arith.constant -8 : i32
    %47 = vector.broadcast %c-8_i32_13 : i32 to vector<8x1xi32>
    %48 = arith.andi %42, %47 : vector<8x1xi32>
    %49 = tpu.bitcast %48 : vector<8x1xi32> -> vector<8x1xf32>
    %c1_i32 = arith.constant 1 : i32
    %50 = vector.broadcast %c1_i32 : i32 to vector<8x128xi32>
    %51 = arith.cmpi eq, %15, %50 : vector<8x128xi32>
    %52 = vector.shape_cast %49 : vector<8x1xf32> to vector<8x1xf32>
    %53 = vector.broadcast %52 : vector<8x1xf32> to vector<8x128xf32>
    %54 = arith.select %51, %53, %31 : vector<8x128xi1>, vector<8x128xf32>
    %c3_i32 = arith.constant 3 : i32
    %55 = vector.broadcast %c3_i32 : i32 to vector<8x128xi32>
    %56 = arith.cmpi eq, %15, %55 : vector<8x128xi32>
    %57 = vector.shape_cast %46 : vector<8x1xi32> to vector<8x1xi32>
    %58 = vector.broadcast %57 : vector<8x1xi32> to vector<8x128xi32>
    %59 = arith.select %56, %58, %36 : vector<8x128xi1>, vector<8x128xi32>
    %60 = arith.addf %26, %49 : vector<8x1xf32>
    %cst_14 = arith.constant 9.99999968E-21 : f32
    %61 = vector.broadcast %cst_14 : f32 to vector<8x1xf32>
    %62 = arith.addf %60, %61 : vector<8x1xf32>
    %63 = tpu.reciprocal %62 {approx = true} : vector<8x1xf32> -> vector<8x1xf32>
    %c2_i32_15 = arith.constant 2 : i32
    %64 = vector.broadcast %c2_i32_15 : i32 to vector<8x128xi32>
    %65 = arith.cmpi slt, %15, %64 : vector<8x128xi32>
    %66 = vector.broadcast %63 : vector<8x1xf32> to vector<8x128xf32>
    %67 = arith.mulf %54, %66 : vector<8x128xf32>
    %68 = tpu.bitcast %67 : vector<8x128xf32> -> vector<8x128xi32>
    %69 = arith.select %65, %68, %59 : vector<8x128xi1>, vector<8x128xi32>
    %c0_16 = arith.constant 0 : index
    %c0_17 = arith.constant 0 : index
    %70 = vector.load %arg3[%c0_16, %c0_17] : memref<8x128xi32, #tpu.memory_space<vmem>>, vector<8x128xi32>
    tpu.vector_store %arg3[%c0_16, %c0_17], %69 {strides = array<i32>} : memref<8x128xi32, #tpu.memory_space<vmem>>, vector<8x128xi32>,
    return
  }
  func.func @transform_0(%arg0: i32) -> (i32, i32) {
    %c0_i32 = arith.constant 0 : i32
    %c0_i32_0 = arith.constant 0 : i32
    return %arg0, %c0_i32 : i32, i32
  }
  func.func @transform_1(%arg0: i32) -> (i32, i32) {
    %c0_i32 = arith.constant 0 : i32
    %c0_i32_0 = arith.constant 0 : i32
    %c0_i32_1 = arith.constant 0 : i32
    return %c0_i32, %c0_i32_0 : i32, i32
  }
  func.func @transform_2(%arg0: i32) -> (i32, i32) {
    %c0_i32 = arith.constant 0 : i32
    %c0_i32_0 = arith.constant 0 : i32
    return %arg0, %c0_i32 : i32, i32
  }
}

module attributes {stable_mosaic.version = 11 : i64} {
  func.func @_moe_gate_kernel(%arg0: i32, %arg1: memref<8x32xf32, #tpu.memory_space<vmem>>, %arg2: memref<32x8xf32, #tpu.memory_space<vmem>>, %arg3: memref<8x128xi32, #tpu.memory_space<vmem>>) attributes {dimension_semantics = [#tpu.dimension_semantics<parallel>], iteration_bounds = array<i64: 2>, scalar_prefetch = 0 : i64, scratch_operands = 0 : i64, tpu.core_type = #tpu.core_type<tc>, window_params = [{transform_indices = @transform_0, window_bounds = array<i64: 8, 32>}, {pipeline_mode = #tpu.pipeline_mode<synchronous>, transform_indices = @transform_1, window_bounds = array<i64: 32, 8>}, {transform_indices = @transform_2, window_bounds = array<i64: 8, 128>}]} {
    %c0 = arith.constant 0 : index
    %c0_0 = arith.constant 0 : index
    %0 = vector.load %arg1[%c0, %c0_0] : memref<8x32xf32, #tpu.memory_space<vmem>>, vector<8x32xf32>
    %c0_1 = arith.constant 0 : index
    %c0_2 = arith.constant 0 : index
    %1 = vector.load %arg2[%c0_1, %c0_2] : memref<32x8xf32, #tpu.memory_space<vmem>>, vector<32x8xf32>
    %cst = arith.constant dense<0.000000e+00> : vector<8x8xf32>
    %2 = tpu.matmul %0, %1, %cst {dimension_numbers = #tpu.dot_dimension_numbers<[1], [0], [0], [1], [0, 0, 1, 1], [], []>} : vector<8x32xf32>, vector<32x8xf32>, vector<8x8xf32> -> vector<8x8xf32>
    %cst_3 = arith.constant dense<0xFF800000> : vector<8xf32>
    %3 = vector.multi_reduction <maximumf>, %2, %cst_3 [1] : vector<8x8xf32> to vector<8xf32>
    %4 = vector.shape_cast %3 : vector<8xf32> to vector<8x1xf32>
    %5 = vector.broadcast %4 : vector<8x1xf32> to vector<8x8xf32>
    %6 = arith.subf %2, %5 : vector<8x8xf32>
    %7 = math.exp %6 : vector<8x8xf32>
    %8 = tpu.iota {dimensions = array<i32: 1>} : vector<8x8xi32>
    %9 = tpu.bitcast %7 : vector<8x8xf32> -> vector<8x8xi32>
    %c-8_i32 = arith.constant -8 : i32
    %10 = vector.broadcast %c-8_i32 : i32 to vector<8x8xi32>
    %11 = arith.andi %9, %10 : vector<8x8xi32>
    %c7_i32 = arith.constant 7 : i32
    %12 = vector.broadcast %c7_i32 : i32 to vector<8x8xi32>
    %13 = arith.subi %12, %8 : vector<8x8xi32>
    %14 = arith.ori %11, %13 : vector<8x8xi32>
    %15 = tpu.iota {dimensions = array<i32: 1>} : vector<8x128xi32>
    %cst_4 = arith.constant 0.000000e+00 : f32
    %16 = vector.broadcast %cst_4 : f32 to vector<8x128xf32>
    %c0_i32 = arith.constant 0 : i32
    %17 = vector.broadcast %c0_i32 : i32 to vector<8x128xi32>
    %cst_5 = arith.constant dense<-2147483648> : vector<8xi32>
    %18 = vector.multi_reduction <maxsi>, %14, %cst_5 [1] : vector<8x8xi32> to vector<8xi32>
    %19 = vector.shape_cast %18 : vector<8xi32> to vector<8x1xi32>
    %c7_i32_6 = arith.constant 7 : i32
    %20 = vector.broadcast %c7_i32_6 : i32 to vector<8x1xi32>
    %21 = arith.andi %19, %20 : vector<8x1xi32>
    %c7_i32_7 = arith.constant 7 : i32
    %22 = vector.broadcast %c7_i32_7 : i32 to vector<8x1xi32>
    %23 = arith.subi %22, %21 : vector<8x1xi32>
    %c-8_i32_8 = arith.constant -8 : i32
    %24 = vector.broadcast %c-8_i32_8 : i32 to vector<8x1xi32>
    %25 = arith.andi %19, %24 : vector<8x1xi32>
    %26 = tpu.bitcast %25 : vector<8x1xi32> -> vector<8x1xf32>
    %c0_i32_9 = arith.constant 0 : i32
    %27 = vector.broadcast %c0_i32_9 : i32 to vector<8x128xi32>
    %28 = arith.cmpi eq, %15, %27 : vector<8x128xi32>
    %29 = vector.shape_cast %26 : vector<8x1xf32> to vector<8x1xf32>
    %30 = vector.broadcast %29 : vector<8x1xf32> to vector<8x128xf32>
    %31 = arith.select %28, %30, %16 : vector<8x128xi1>, vector<8x128xf32>
    %c2_i32 = arith.constant 2 : i32
    %32 = vector.broadcast %c2_i32 : i32 to vector<8x128xi32>
    %33 = arith.cmpi eq, %15, %32 : vector<8x128xi32>
    %34 = vector.shape_cast %23 : vector<8x1xi32> to vector<8x1xi32>
    %35 = vector.broadcast %34 : vector<8x1xi32> to vector<8x128xi32>
    %36 = arith.select %33, %35, %17 : vector<8x128xi1>, vector<8x128xi32>
    %37 = vector.broadcast %19 : vector<8x1xi32> to vector<8x8xi32>
    %38 = arith.cmpi eq, %14, %37 : vector<8x8xi32>
    %c-1_i32 = arith.constant -1 : i32
    %39 = vector.broadcast %c-1_i32 : i32 to vector<8x8xi32>
    %40 = arith.select %38, %39, %14 : vector<8x8xi1>, vector<8x8xi32>
    %cst_10 = arith.constant dense<-2147483648> : vector<8xi32>
    %41 = vector.multi_reduction <maxsi>, %40, %cst_10 [1] : vector<8x8xi32> to vector<8xi32>
    %42 = vector.shape_cast %41 : vector<8xi32> to vector<8x1xi32>
    %c7_i32_11 = arith.constant 7 : i32
    %43 = vector.broadcast %c7_i32_11 : i32 to vector<8x1xi32>
    %44 = arith.andi %42, %43 : vector<8x1xi32>
    %c7_i32_12 = arith.constant 7 : i32
    %45 = vector.broadcast %c7_i32_12 : i32 to vector<8x1xi32>
    %46 = arith.subi %45, %44 : vector<8x1xi32>
    %c-8_i32_13 = arith.constant -8 : i32
    %47 = vector.broadcast %c-8_i32_13 : i32 to vector<8x1xi32>
    %48 = arith.andi %42, %47 : vector<8x1xi32>
    %49 = tpu.bitcast %48 : vector<8x1xi32> -> vector<8x1xf32>
    %c1_i32 = arith.constant 1 : i32
    %50 = vector.broadcast %c1_i32 : i32 to vector<8x128xi32>
    %51 = arith.cmpi eq, %15, %50 : vector<8x128xi32>
    %52 = vector.shape_cast %49 : vector<8x1xf32> to vector<8x1xf32>
    %53 = vector.broadcast %52 : vector<8x1xf32> to vector<8x128xf32>
    %54 = arith.select %51, %53, %31 : vector<8x128xi1>, vector<8x128xf32>
    %c3_i32 = arith.constant 3 : i32
    %55 = vector.broadcast %c3_i32 : i32 to vector<8x128xi32>
    %56 = arith.cmpi eq, %15, %55 : vector<8x128xi32>
    %57 = vector.shape_cast %46 : vector<8x1xi32> to vector<8x1xi32>
    %58 = vector.broadcast %57 : vector<8x1xi32> to vector<8x128xi32>
    %59 = arith.select %56, %58, %36 : vector<8x128xi1>, vector<8x128xi32>
    %60 = arith.addf %26, %49 : vector<8x1xf32>
    %cst_14 = arith.constant 9.99999968E-21 : f32
    %61 = vector.broadcast %cst_14 : f32 to vector<8x1xf32>
    %62 = arith.addf %60, %61 : vector<8x1xf32>
    %63 = tpu.reciprocal %62 {approx = true} : vector<8x1xf32> -> vector<8x1xf32>
    %c2_i32_15 = arith.constant 2 : i32
    %64 = vector.broadcast %c2_i32_15 : i32 to vector<8x128xi32>
    %65 = arith.cmpi slt, %15, %64 : vector<8x128xi32>
    %66 = vector.broadcast %63 : vector<8x1xf32> to vector<8x128xf32>
    %67 = arith.mulf %54, %66 : vector<8x128xf32>
    %68 = tpu.bitcast %67 : vector<8x128xf32> -> vector<8x128xi32>
    %69 = arith.select %65, %68, %59 : vector<8x128xi1>, vector<8x128xi32>
    %c0_16 = arith.constant 0 : index
    %c0_17 = arith.constant 0 : index
    %70 = vector.load %arg3[%c0_16, %c0_17] : memref<8x128xi32, #tpu.memory_space<vmem>>, vector<8x128xi32>
    tpu.vector_store %arg3[%c0_16, %c0_17], %69 {strides = array<i32>} : memref<8x128xi32, #tpu.memory_space<vmem>>, vector<8x128xi32>,
    return
  }
  func.func @transform_0(%arg0: i32) -> (i32, i32) {
    %c0_i32 = arith.constant 0 : i32
    %c0_i32_0 = arith.constant 0 : i32
    return %arg0, %c0_i32 : i32, i32
  }
  func.func @transform_1(%arg0: i32) -> (i32, i32) {
    %c0_i32 = arith.constant 0 : i32
    %c0_i32_0 = arith.constant 0 : i32
    %c0_i32_1 = arith.constant 0 : i32
    return %c0_i32, %c0_i32_0 : i32, i32
  }
  func.func @transform_2(%arg0: i32) -> (i32, i32) {
    %c0_i32 = arith.constant 0 : i32
    %c0_i32_0 = arith.constant 0 : i32
    return %arg0, %c0_i32 : i32, i32
  }
}

</mosaic_0001>

<bundles_post_ra>
// kernel: tpu_custom_call.1
= control target key start
LH: loop header
LB: loop body
LE: loop exit
PB: predicated region body
PF: predicated region fallthrough
CT: control target
= control target key end

     0   :  { %7 = vsyncpa [#allocation3], 0  ;;  %s645_s0 = inlined_call_operand.vmem [shape: f32[16,32], index: 0, kind: input, shape index: {}]   ;;  %s646_s1 = inlined_call_operand.vmem [shape: f32[32,8], index: 1, kind: input, shape index: {}]   ;;  %s647_s2 = inlined_call_operand.hbm [shape: s32[16,128], index: 2, kind: output, shape index: {}]  }
   0x1   :  { %9 = vsyncpa [#allocation3 + $0x1], 0  ;;  %s522_s9 = smov 0   ;;  %s524_s10 = smov 0  }
   0x2   :  { %s526_s11 = smov 0   ;;  %s528_s12 = smov 0  }
   0x3 LB: > { %s543_s13 = sadd.s32 4294967295, %s501_s12   ;;  %s360_s14 = sadd.s32 4294967294, %s501_s12   ;;  %s501_s12 = sphi %s528_s12, %s653_s12   ;;  %s497_s11 = sphi %s526_s11, %s652_s11   ;;  %s493_s10 = sphi %s524_s10, %s651_s10   ;;  %s489_s9 = sphi %s522_s9, %s650_s9  }
   0x4   : > { %s547_s15 = sadd.s32 1, %s501_s12   ;;  %s69_s16 = sadd.s32 1, %s497_s11 }
   0x5   : > { %s66_s17 = ssub.s32 %s501_s12, %s547_s15  ;;  %p79_p0 = scmp.ne.s32.totalorder %s497_s11, %s493_s10 }
   0x6   : > { %p67_p1 = scmp.eq.s32.totalorder %s66_s17, 0  ;;  %p80_p2 = scmp.eq.s32.totalorder %s543_s13, 1 }
   0x7   : > { %p85_p3 = scmp.ne.s32.totalorder %s493_s10, %s489_s9  ;;  %p86_p4 = scmp.eq.s32.totalorder %s360_s14, 1 }
   0x8   : > { %s558_s18 = scalar_select %p67_p1, %s497_s11, %s69_s16  }
   0x9   : > { %p560_p5 = por %p80_p2, %p79_p0  ;;  %p564_p6 = por %p86_p4, %p85_p3 }
   0xa   : > { %p363_p7 = scmp.ge.s32.totalorder %s501_s12, 1  ;;  %p114_p8 = scmp.lt.s32.totalorder %s501_s12, 3 }
   0xc   : > { %p115_p9 = pnand %p363_p7, %p114_p8 }
   0xd   : > { %v140_v0 = vld [vmem:[%s646_s1] sm:$0xff] (!%p115_p9)  ;;  %v141_v1 = vld [vmem:[%s646_s1 + $0x8] sm:$0xff] (!%p115_p9)  ;;  %v142_v2 = vld [vmem:[%s646_s1 + $0x10] sm:$0xff] (!%p115_p9)  ;;  %v503_v3 = vmov (!%p115_p9), 0.0|0.0   ;;  %vm504_vm0 = vmmov (!%p115_p9), 0   ;;  %v505_v6 = vmov (!%p115_p9), 0.0   ;;  %v225_v15 = vlaneseq (!%p115_p9) }
   0xe   : > { %118 = sbr.rel (%p115_p9) target bundleno = 1026 (0x402), region = 28  ;;  %387 = vmatprep.subr.bf16.mxu0 (!%p115_p9), %v503_v3  ;;  %v388_v4 = vpack.c.bf16 (!%p115_p9), %v141_v1, %v140_v0  ;;  %v143_v5 = vld [vmem:[%s646_s1 + $0x18] sm:$0xff] (!%p115_p9)  ;;  %384 = vmatprep.mubr.msk.f32.mxu0 (!%p115_p9), %vm504_vm0, %v505_v6  ;;  %p135_p10 = scmp.lt.s32.totalorder (!%p115_p9), %s543_s13, 1  ;;  %vm144_vm1 = vcmask (!%p115_p9), 261120   ;;  %vm218_vm2 = vcmask (!%p115_p9), 64512  }
   0xf   : > { %v391_v7 = vpack.c.bf16 (!%p115_p9), %v143_v5, %v142_v2  ;;  %v588_v16 = vand.u32 (!%p115_p9), 127, %v225_v15  ;;  %s132_s6 = sand.u32 (!%p115_p9), 1, %s493_s10   ;;  %s368_s8 = sshll.u32 (!%p115_p9), %s543_s13, 7 }
  0x10   : > { %389 = vmatpush3.bf16.msra.mxu0 (!%p115_p9), %v388_v4  ;;  %s364_s7 = sshll.u32 (!%p115_p9), %s132_s6, 3  ;;  %s603_s22 = scalar_lea.hbm (!%p115_p9), %s647_s2, %s368_s8 }
  0x11   : > { %390 = vmatprep.subr.bf16.mxu0 (!%p115_p9), %v503_v3  ;;  %v229_v17 = vsub.s32 (!%p115_p9), 7, %v588_v16  ;;  %vm250_vm6 = vcmp.eq.s32.totalorder (!%p115_p9), %v588_v16, 0  ;;  %vm275_vm7 = vcmp.eq.s32.totalorder (!%p115_p9), %v588_v16, 1  ;;  %vm252_vm8 = vcmp.eq.s32.totalorder (!%p115_p9), %v588_v16, 2  ;;  %s134_s14 = scalar_lea.vmem (!%p115_p9), [#allocation2], %s364_s7  ;;  %s288_s23 = scalar_lea.sflag (!%p115_p9), [#allocation3], %s132_s6 }
  0x12   : > { %vm277_vm9 = vcmp.eq.s32.totalorder (!%p115_p9), %v588_v16, 3  ;;  %s301_s16 = sshll.u32 (!%p115_p9), %s134_s14, 4  ;;  %vm282_vm10 = vcmp.lt.s32.totalorder (!%p115_p9), %v588_v16, 2  ;;  %s506_s24 = smov (!%p115_p9), [#allocation2]   ;;  %s605_s16 = int_to_ptr.vmem [resolvable:$true] %s301_s16 }
  0x13   : > { %s443_s25 = sshll.u32 (!%p115_p9), %s506_s24, 4  ;;  %s444_s25 = int_to_ptr.vmem [resolvable:$false] %s443_s25 }
  0x14   : > { %392 = vmatpush3.bf16.msra.mxu0 (!%p115_p9), %v391_v7  ;;  %s445_s26 = scalar_lea.vmem (!%p115_p9), %s444_s25, 256  ;;  %p446_p0 = scmp.lt.s32.totalorder (!%p115_p9), %s605_s16, %s444_s25 }
  0x15   : > { %s136_s29 = scalar_select %p135_p10, %s543_s13, 1 }
  0x16   : > { %s439_s13 = scalar_lea.vmem %s605_s16, 128 }
  0x17   : > { %s365_s30 = sshll.u32 %s136_s29, 3  ;;  %p440_p11 = scmp.ne.s32.totalorder %s605_s16, %s439_s13 }
  0x18   : > { %s138_s5 = scalar_lea.vmem %s645_s0, %s365_s30  ;;  %p447_p1 = scmp.lt.s32.totalorder %s445_s26, %s439_s13 }
  0x19   : > { %v139_v8 = vld [vmem:[%s138_s5] sm:$0xff]  ;;  %p441_p12 = pnand %p440_p11, %p560_p5 }
  0x1a   : > { %385 = vmatmul.mubr.msk.f32.vlgmr.msra.gmra.mrb[0].mxu0 %vm144_vm1, %v139_v8  ;;  %p448_p2 = por %p447_p1, %p446_p0 }
  0x1b   : > { %p442_p13 = pneg %p441_p12 }
  0x1d   : > { %p449_p3 = pnand %p448_p2, %p442_p13 }
  0xed   : > { %v214_v9 = vpop.f32.mrb[0].mxu0 }
  0xee   : > { %v386_v10 = vpop.f32.mrb[1].mxu0  ;;  %v219_v11 = vsel %vm218_vm2, %v214_v9, -inf }
  0xef   : > { %220 = vmax.xlane.f32.xlu0 %v219_v11 }
 0x17c   : > { %v221_v12 = vpop.xlane.xlu0 %220 }
 0x17d   : > { %v222_v13 = vsub.f32 %v214_v9, %v221_v12 }
 0x17f   : > { %v223_v14 = vmul.f32 1.442695, %v222_v13 }
 0x181   : > { %435 = vpow2.f32 %v223_v14 }
 0x18b   : > { %v436_v18 = vpop.eup %435 }
 0x18c   : > { %v228_v19 = vand.u32 4294967288, %v436_v18 }
 0x18e   : > { %v230_v20 = vor.u32 %v229_v17, %v228_v19 }
 0x190   : > { %v231_v21 = vsel %vm218_vm2, %v230_v20, 2147483648 }
 0x191   : > { %v233_v22 = vshra.s32 %v231_v21, 16  ;;  %v232_v24 = vand.u32 65535, %v231_v21 }
 0x193   : > { %v235_v23 = vcvt.s32.f32 %v233_v22  ;;  %v234_v26 = vcvt.s32.f32 %v232_v24 }
 0x195   : > { %236 = vmax.xlane.f32.xlu0 %v235_v23 }
 0x222   : > { %v237_v25 = vpop.xlane.xlu0 %236 }
 0x223   : > { %vm238_vm3 = vcmp.eq.f32.partialorder %v235_v23, %v237_v25  ;;  %v243_v28 = vcvt.f32.s32 %v237_v25 }
 0x224   : > { %v239_v27 = vsel %vm238_vm3, %v234_v26, -inf }
 0x225   : > { %240 = vmax.xlane.f32.xlu1 %v239_v27  ;;  %v244_v30 = vshll.u32 %v243_v28, 16 }
 0x2b2   : > { %v241_v29 = vpop.xlane.xlu1 %240 }
 0x2b3   : > { %v242_v31 = vcvt.f32.s32 %v241_v29 }
 0x2b5   : > { %v245_v32 = vadd.s32 %v244_v30, %v242_v31 }
 0x2b7   : > { %vm254_vm4 = vcmp.eq.s32.totalorder %v230_v20, %v245_v32  ;;  %v246_v42 = vand.u32 7, %v245_v32  ;;  %v248_v46 = vand.u32 4294967288, %v245_v32 }
 0x2b8   : > { %v255_v33 = vsel %vm254_vm4, 4294967295, %v230_v20 }
 0x2b9   : > { %v256_v34 = vsel %vm218_vm2, %v255_v33, 2147483648  ;;  %v247_v48 = vsub.s32 7, %v246_v42  ;;  %v251_v51 = vsel %vm250_vm6, %v248_v46, 0.0 }
 0x2ba   : > { %v258_v35 = vshra.s32 %v256_v34, 16  ;;  %v257_v37 = vand.u32 65535, %v256_v34 }
 0x2bb   : > { %v253_v55 = vsel %vm252_vm8, %v247_v48, 0 }
 0x2bc   : > { %v260_v36 = vcvt.s32.f32 %v258_v35  ;;  %v259_v39 = vcvt.s32.f32 %v257_v37 }
 0x2be   : > { %261 = vmax.xlane.f32.xlu1 %v260_v36 }
 0x34b   : > { %v262_v38 = vpop.xlane.xlu1 %261 }
 0x34c   : > { %vm263_vm5 = vcmp.eq.f32.partialorder %v260_v36, %v262_v38  ;;  %v268_v41 = vcvt.f32.s32 %v262_v38 }
 0x34d   : > { %v264_v40 = vsel %vm263_vm5, %v259_v39, -inf }
 0x34e   : > { %265 = vmax.xlane.f32.xlu0 %v264_v40  ;;  %v269_v44 = vshll.u32 %v268_v41, 16 }
 0x3db   : > { %v266_v43 = vpop.xlane.xlu0 %265 }
 0x3dc   : > { %v267_v45 = vcvt.f32.s32 %v266_v43 }
 0x3de   : > { %v270_v47 = vadd.s32 %v269_v44, %v267_v45 }
 0x3e0   : > { %v271_v49 = vand.u32 7, %v270_v47  ;;  %v273_v50 = vand.u32 4294967288, %v270_v47 }
 0x3e2   : > { %v272_v52 = vsub.s32 7, %v271_v49  ;;  %v276_v53 = vsel %vm275_vm7, %v273_v50, %v251_v51  ;;  %v279_v54 = vadd.f32 %v273_v50, %v248_v46 }
 0x3e4   : > { %v280_v56 = vadd.f32 1e-20, %v279_v54  ;;  %v278_v57 = vsel %vm277_vm9, %v272_v52, %v253_v55 }
 0x3e6   : > { %437 = vrcp.f32 %v280_v56 }
 0x3f0   : > { %v438_v58 = vpop.eup %437 }
 0x3f1   : > { %v283_v59 = vmul.f32 %v438_v58, %v276_v53 }
 0x3f3   : > { %v285_v60 = vsel %vm282_vm10, %v283_v59, %v278_v57 }
 0x3f4   : > { %286 = vst [vmem:[%s134_s14] sm:$0xff] %v285_v60 }
 0x3f5   : > { %452 = shalt.err (!%p449_p3)
}
 0x3f6   : > { %s453_s27 = scalar_lea.hbm %s603_s22, 128  ;;  %s457_s30 = scalar_lea.hbm %s647_s2, 256 }
 0x3f7   : > { %p454_p4 = scmp.ne.s32.totalorder %s603_s22, %s453_s27  ;;  %p458_p9 = scmp.lt.u32.totalorder %s603_s22, %s647_s2 }
 0x3f8   : > { %p459_p10 = scmp.lt.u32.totalorder %s457_s30, %s453_s27  ;;  %p461_p12 = scmp.lt.u32.totalorder %s453_s27, %s603_s22 }
 0x3f9   : > { %p455_p7 = pnand %p454_p4, %p560_p5 }
 0x3fa   : > { %p460_p11 = por %p459_p10, %p458_p9 }
 0x3fb   : > { %p456_p8 = pneg %p455_p7 }
 0x3fc   : > { %p462_p13 = por %p461_p12, %p460_p11 }
 0x3fe   : > { %p463_p0 = pnand %p462_p13, %p456_p8 }
 0x400   : > { %466 = shalt.err (!%p463_p0)
}
 0x401   : > { %393 = dma.vmem_to_hbm [thread:$0]  (%p560_p5), %s605_s16, 128, %s603_s22, %s288_s23  }
 0x402 PF: > { %p399_p1 = scmp.ge.s32.totalorder %s501_s12, 2  ;;  %s313_s5 = sand.u32 1, %s489_s9  }
 0x403   : > { %s314_s6 = scalar_lea.sflag [#allocation3], %s313_s5 }
 0x404   : > { %p396_p2 = pnand %p399_p1, %p564_p6 }
 0x406   : > { %484 = dma.done.wait (!%p396_p2), %s314_s6, 128  }
 0x407   : > { %486 = vsyncadd (!%p396_p2), %s314_s6, 4294967168  ;;  %p12_p3 = scmp.ge.s32.totalorder %s547_s15, 4   ;;  %s650_s9 = smov %s493_s10 }
 0x408   : > { %s651_s10 = smov %s497_s11  ;;  %s652_s11 = smov %s558_s18 }
 0x409   : > { %s653_s12 = smov %s547_s15  ;;  %14 = sbr.rel (!%p12_p3) target bundleno = 3 (0x3), region = 63 }
 0x410   :  { %319 = vsyncpa [#allocation3], 1 }
 0x411   :  { %321 = vsyncpa [#allocation3 + $0x1], 1 }

// kernel: tpu_custom_call.1
= control target key start
LH: loop header
LB: loop body
LE: loop exit
PB: predicated region body
PF: predicated region fallthrough
CT: control target
= control target key end

     0   :  { %7 = vsyncpa [#allocation3], 0  ;;  %s645_s0 = inlined_call_operand.vmem [shape: f32[16,32], index: 0, kind: input, shape index: {}]   ;;  %s646_s1 = inlined_call_operand.vmem [shape: f32[32,8], index: 1, kind: input, shape index: {}]   ;;  %s647_s2 = inlined_call_operand.hbm [shape: s32[16,128], index: 2, kind: output, shape index: {}]  }
   0x1   :  { %9 = vsyncpa [#allocation3 + $0x1], 0  ;;  %s522_s9 = smov 0   ;;  %s524_s10 = smov 0  }
   0x2   :  { %s526_s11 = smov 0   ;;  %s528_s12 = smov 0  }
   0x3 LB: > { %s543_s13 = sadd.s32 4294967295, %s501_s12   ;;  %s360_s14 = sadd.s32 4294967294, %s501_s12   ;;  %s501_s12 = sphi %s528_s12, %s653_s12   ;;  %s497_s11 = sphi %s526_s11, %s652_s11   ;;  %s493_s10 = sphi %s524_s10, %s651_s10   ;;  %s489_s9 = sphi %s522_s9, %s650_s9  }
   0x4   : > { %s547_s15 = sadd.s32 1, %s501_s12   ;;  %s69_s16 = sadd.s32 1, %s497_s11 }
   0x5   : > { %s66_s17 = ssub.s32 %s501_s12, %s547_s15  ;;  %p79_p0 = scmp.ne.s32.totalorder %s497_s11, %s493_s10 }
   0x6   : > { %p67_p1 = scmp.eq.s32.totalorder %s66_s17, 0  ;;  %p80_p2 = scmp.eq.s32.totalorder %s543_s13, 1 }
   0x7   : > { %p85_p3 = scmp.ne.s32.totalorder %s493_s10, %s489_s9  ;;  %p86_p4 = scmp.eq.s32.totalorder %s360_s14, 1 }
   0x8   : > { %s558_s18 = scalar_select %p67_p1, %s497_s11, %s69_s16  }
   0x9   : > { %p560_p5 = por %p80_p2, %p79_p0  ;;  %p564_p6 = por %p86_p4, %p85_p3 }
   0xa   : > { %p363_p7 = scmp.ge.s32.totalorder %s501_s12, 1  ;;  %p114_p8 = scmp.lt.s32.totalorder %s501_s12, 3 }
   0xc   : > { %p115_p9 = pnand %p363_p7, %p114_p8 }
   0xd   : > { %v140_v0 = vld [vmem:[%s646_s1] sm:$0xff] (!%p115_p9)  ;;  %v141_v1 = vld [vmem:[%s646_s1 + $0x8] sm:$0xff] (!%p115_p9)  ;;  %v142_v2 = vld [vmem:[%s646_s1 + $0x10] sm:$0xff] (!%p115_p9)  ;;  %v503_v3 = vmov (!%p115_p9), 0.0|0.0   ;;  %vm504_vm0 = vmmov (!%p115_p9), 0   ;;  %v505_v6 = vmov (!%p115_p9), 0.0   ;;  %v225_v15 = vlaneseq (!%p115_p9) }
   0xe   : > { %118 = sbr.rel (%p115_p9) target bundleno = 1026 (0x402), region = 28  ;;  %387 = vmatprep.subr.bf16.mxu0 (!%p115_p9), %v503_v3  ;;  %v388_v4 = vpack.c.bf16 (!%p115_p9), %v141_v1, %v140_v0  ;;  %v143_v5 = vld [vmem:[%s646_s1 + $0x18] sm:$0xff] (!%p115_p9)  ;;  %384 = vmatprep.mubr.msk.f32.mxu0 (!%p115_p9), %vm504_vm0, %v505_v6  ;;  %p135_p10 = scmp.lt.s32.totalorder (!%p115_p9), %s543_s13, 1  ;;  %vm144_vm1 = vcmask (!%p115_p9), 261120   ;;  %vm218_vm2 = vcmask (!%p115_p9), 64512  }
   0xf   : > { %v391_v7 = vpack.c.bf16 (!%p115_p9), %v143_v5, %v142_v2  ;;  %v588_v16 = vand.u32 (!%p115_p9), 127, %v225_v15  ;;  %s132_s6 = sand.u32 (!%p115_p9), 1, %s493_s10   ;;  %s368_s8 = sshll.u32 (!%p115_p9), %s543_s13, 7 }
  0x10   : > { %389 = vmatpush3.bf16.msra.mxu0 (!%p115_p9), %v388_v4  ;;  %s364_s7 = sshll.u32 (!%p115_p9), %s132_s6, 3  ;;  %s603_s22 = scalar_lea.hbm (!%p115_p9), %s647_s2, %s368_s8 }
  0x11   : > { %390 = vmatprep.subr.bf16.mxu0 (!%p115_p9), %v503_v3  ;;  %v229_v17 = vsub.s32 (!%p115_p9), 7, %v588_v16  ;;  %vm250_vm6 = vcmp.eq.s32.totalorder (!%p115_p9), %v588_v16, 0  ;;  %vm275_vm7 = vcmp.eq.s32.totalorder (!%p115_p9), %v588_v16, 1  ;;  %vm252_vm8 = vcmp.eq.s32.totalorder (!%p115_p9), %v588_v16, 2  ;;  %s134_s14 = scalar_lea.vmem (!%p115_p9), [#allocation2], %s364_s7  ;;  %s288_s23 = scalar_lea.sflag (!%p115_p9), [#allocation3], %s132_s6 }
  0x12   : > { %vm277_vm9 = vcmp.eq.s32.totalorder (!%p115_p9), %v588_v16, 3  ;;  %s301_s16 = sshll.u32 (!%p115_p9), %s134_s14, 4  ;;  %vm282_vm10 = vcmp.lt.s32.totalorder (!%p115_p9), %v588_v16, 2  ;;  %s506_s24 = smov (!%p115_p9), [#allocation2]   ;;  %s605_s16 = int_to_ptr.vmem [resolvable:$true] %s301_s16 }
  0x13   : > { %s443_s25 = sshll.u32 (!%p115_p9), %s506_s24, 4  ;;  %s444_s25 = int_to_ptr.vmem [resolvable:$false] %s443_s25 }
  0x14   : > { %392 = vmatpush3.bf16.msra.mxu0 (!%p115_p9), %v391_v7  ;;  %s445_s26 = scalar_lea.vmem (!%p115_p9), %s444_s25, 256  ;;  %p446_p0 = scmp.lt.s32.totalorder (!%p115_p9), %s605_s16, %s444_s25 }
  0x15   : > { %s136_s29 = scalar_select %p135_p10, %s543_s13, 1 }
  0x16   : > { %s439_s13 = scalar_lea.vmem %s605_s16, 128 }
  0x17   : > { %s365_s30 = sshll.u32 %s136_s29, 3  ;;  %p440_p11 = scmp.ne.s32.totalorder %s605_s16, %s439_s13 }
  0x18   : > { %s138_s5 = scalar_lea.vmem %s645_s0, %s365_s30  ;;  %p447_p1 = scmp.lt.s32.totalorder %s445_s26, %s439_s13 }
  0x19   : > { %v139_v8 = vld [vmem:[%s138_s5] sm:$0xff]  ;;  %p441_p12 = pnand %p440_p11, %p560_p5 }
  0x1a   : > { %385 = vmatmul.mubr.msk.f32.vlgmr.msra.gmra.mrb[0].mxu0 %vm144_vm1, %v139_v8  ;;  %p448_p2 = por %p447_p1, %p446_p0 }
  0x1b   : > { %p442_p13 = pneg %p441_p12 }
  0x1d   : > { %p449_p3 = pnand %p448_p2, %p442_p13 }
  0xed   : > { %v214_v9 = vpop.f32.mrb[0].mxu0 }
  0xee   : > { %v386_v10 = vpop.f32.mrb[1].mxu0  ;;  %v219_v11 = vsel %vm218_vm2, %v214_v9, -inf }
  0xef   : > { %220 = vmax.xlane.f32.xlu0 %v219_v11 }
 0x17c   : > { %v221_v12 = vpop.xlane.xlu0 %220 }
 0x17d   : > { %v222_v13 = vsub.f32 %v214_v9, %v221_v12 }
 0x17f   : > { %v223_v14 = vmul.f32 1.442695, %v222_v13 }
 0x181   : > { %435 = vpow2.f32 %v223_v14 }
 0x18b   : > { %v436_v18 = vpop.eup %435 }
 0x18c   : > { %v228_v19 = vand.u32 4294967288, %v436_v18 }
 0x18e   : > { %v230_v20 = vor.u32 %v229_v17, %v228_v19 }
 0x190   : > { %v231_v21 = vsel %vm218_vm2, %v230_v20, 2147483648 }
 0x191   : > { %v233_v22 = vshra.s32 %v231_v21, 16  ;;  %v232_v24 = vand.u32 65535, %v231_v21 }
 0x193   : > { %v235_v23 = vcvt.s32.f32 %v233_v22  ;;  %v234_v26 = vcvt.s32.f32 %v232_v24 }
 0x195   : > { %236 = vmax.xlane.f32.xlu0 %v235_v23 }
 0x222   : > { %v237_v25 = vpop.xlane.xlu0 %236 }
 0x223   : > { %vm238_vm3 = vcmp.eq.f32.partialorder %v235_v23, %v237_v25  ;;  %v243_v28 = vcvt.f32.s32 %v237_v25 }
 0x224   : > { %v239_v27 = vsel %vm238_vm3, %v234_v26, -inf }
 0x225   : > { %240 = vmax.xlane.f32.xlu1 %v239_v27  ;;  %v244_v30 = vshll.u32 %v243_v28, 16 }
 0x2b2   : > { %v241_v29 = vpop.xlane.xlu1 %240 }
 0x2b3   : > { %v242_v31 = vcvt.f32.s32 %v241_v29 }
 0x2b5   : > { %v245_v32 = vadd.s32 %v244_v30, %v242_v31 }
 0x2b7   : > { %vm254_vm4 = vcmp.eq.s32.totalorder %v230_v20, %v245_v32  ;;  %v246_v42 = vand.u32 7, %v245_v32  ;;  %v248_v46 = vand.u32 4294967288, %v245_v32 }
 0x2b8   : > { %v255_v33 = vsel %vm254_vm4, 4294967295, %v230_v20 }
 0x2b9   : > { %v256_v34 = vsel %vm218_vm2, %v255_v33, 2147483648  ;;  %v247_v48 = vsub.s32 7, %v246_v42  ;;  %v251_v51 = vsel %vm250_vm6, %v248_v46, 0.0 }
 0x2ba   : > { %v258_v35 = vshra.s32 %v256_v34, 16  ;;  %v257_v37 = vand.u32 65535, %v256_v34 }
 0x2bb   : > { %v253_v55 = vsel %vm252_vm8, %v247_v48, 0 }
 0x2bc   : > { %v260_v36 = vcvt.s32.f32 %v258_v35  ;;  %v259_v39 = vcvt.s32.f32 %v257_v37 }
 0x2be   : > { %261 = vmax.xlane.f32.xlu1 %v260_v36 }
 0x34b   : > { %v262_v38 = vpop.xlane.xlu1 %261 }
 0x34c   : > { %vm263_vm5 = vcmp.eq.f32.partialorder %v260_v36, %v262_v38  ;;  %v268_v41 = vcvt.f32.s32 %v262_v38 }
 0x34d   : > { %v264_v40 = vsel %vm263_vm5, %v259_v39, -inf }
 0x34e   : > { %265 = vmax.xlane.f32.xlu0 %v264_v40  ;;  %v269_v44 = vshll.u32 %v268_v41, 16 }
 0x3db   : > { %v266_v43 = vpop.xlane.xlu0 %265 }
 0x3dc   : > { %v267_v45 = vcvt.f32.s32 %v266_v43 }
 0x3de   : > { %v270_v47 = vadd.s32 %v269_v44, %v267_v45 }
 0x3e0   : > { %v271_v49 = vand.u32 7, %v270_v47  ;;  %v273_v50 = vand.u32 4294967288, %v270_v47 }
 0x3e2   : > { %v272_v52 = vsub.s32 7, %v271_v49  ;;  %v276_v53 = vsel %vm275_vm7, %v273_v50, %v251_v51  ;;  %v279_v54 = vadd.f32 %v273_v50, %v248_v46 }
 0x3e4   : > { %v280_v56 = vadd.f32 1e-20, %v279_v54  ;;  %v278_v57 = vsel %vm277_vm9, %v272_v52, %v253_v55 }
 0x3e6   : > { %437 = vrcp.f32 %v280_v56 }
 0x3f0   : > { %v438_v58 = vpop.eup %437 }
 0x3f1   : > { %v283_v59 = vmul.f32 %v438_v58, %v276_v53 }
 0x3f3   : > { %v285_v60 = vsel %vm282_vm10, %v283_v59, %v278_v57 }
 0x3f4   : > { %286 = vst [vmem:[%s134_s14] sm:$0xff] %v285_v60 }
 0x3f5   : > { %452 = shalt.err (!%p449_p3)
}
 0x3f6   : > { %s453_s27 = scalar_lea.hbm %s603_s22, 128  ;;  %s457_s30 = scalar_lea.hbm %s647_s2, 256 }
 0x3f7   : > { %p454_p4 = scmp.ne.s32.totalorder %s603_s22, %s453_s27  ;;  %p458_p9 = scmp.lt.u32.totalorder %s603_s22, %s647_s2 }
 0x3f8   : > { %p459_p10 = scmp.lt.u32.totalorder %s457_s30, %s453_s27  ;;  %p461_p12 = scmp.lt.u32.totalorder %s453_s27, %s603_s22 }
 0x3f9   : > { %p455_p7 = pnand %p454_p4, %p560_p5 }
 0x3fa   : > { %p460_p11 = por %p459_p10, %p458_p9 }
 0x3fb   : > { %p456_p8 = pneg %p455_p7 }
 0x3fc   : > { %p462_p13 = por %p461_p12, %p460_p11 }
 0x3fe   : > { %p463_p0 = pnand %p462_p13, %p456_p8 }
 0x400   : > { %466 = shalt.err (!%p463_p0)
}
 0x401   : > { %393 = dma.vmem_to_hbm [thread:$0]  (%p560_p5), %s605_s16, 128, %s603_s22, %s288_s23  }
 0x402 PF: > { %p399_p1 = scmp.ge.s32.totalorder %s501_s12, 2  ;;  %s313_s5 = sand.u32 1, %s489_s9  }
 0x403   : > { %s314_s6 = scalar_lea.sflag [#allocation3], %s313_s5 }
 0x404   : > { %p396_p2 = pnand %p399_p1, %p564_p6 }
 0x406   : > { %484 = dma.done.wait (!%p396_p2), %s314_s6, 128  }
 0x407   : > { %486 = vsyncadd (!%p396_p2), %s314_s6, 4294967168  ;;  %p12_p3 = scmp.ge.s32.totalorder %s547_s15, 4   ;;  %s650_s9 = smov %s493_s10 }
 0x408   : > { %s651_s10 = smov %s497_s11  ;;  %s652_s11 = smov %s558_s18 }
 0x409   : > { %s653_s12 = smov %s547_s15  ;;  %14 = sbr.rel (!%p12_p3) target bundleno = 3 (0x3), region = 63 }
 0x410   :  { %319 = vsyncpa [#allocation3], 1 }
 0x411   :  { %321 = vsyncpa [#allocation3 + $0x1], 1 }

</bundles_post_ra>
